<compile_context>
chip_gen: v5e
topology: v5e:2x2
jax: 0.10.0
libtpu: 0.0.40
codegen_flags: <defaults>
</compile_context>

<pallas_src>
import functools

import jax
import jax.numpy as jnp
from jax.experimental import pallas as pl
from jax.experimental.pallas import tpu as pltpu


def _round_up(x, m):
    return (x + m - 1) // m * m


def qfocal_kernel(pred_ref, tgt_ref, out_ref, *, alpha, gamma):
    """One sample-tile of the QFocal loss.

    pred_ref: (C, TILE_N) f32  -- classes on sublanes, samples on lanes
    tgt_ref:  (1, TILE_N) i32  -- target class per sample, -1 for padded samples
    out_ref:  (8, 128)    f32  -- per-tile partials: sublane 0 = loss sum,
                                  sublane 1 = nonzero-target count
    """
    pred = pred_ref[...]
    tgt = tgt_ref[...]
    c, tn = pred.shape

    # one_hot[j, i] = (j == target[i]); sentinel -1 matches nothing.
    class_ids = jax.lax.broadcasted_iota(jnp.int32, (c, tn), 0)
    one_hot = class_ids == tgt

    # Gather the target-class probability per sample via a sublane reduction:
    # p[0, i] = pred[target[i], i].  All transcendental / pow work below runs
    # on this lane-dense (1, TILE_N) vector, not the full (C, TILE_N) tile.
    p = jnp.sum(jnp.where(one_hot, pred, 0.0), axis=0, keepdims=True)

    valid = (tgt >= 0).astype(jnp.float32)  # 0 for sentinel-padded samples
    # gamma is a static Python int -> integer_pow -> plain VPU multiplies.
    row_loss = valid * (-alpha) * (1.0 - p) ** gamma * jnp.log(p + 1e-08)

    tile_loss = jnp.sum(row_loss)
    tile_cnt = jnp.sum((tgt > 0).astype(jnp.float32))

    # Write the two partial scalars into an aligned (8, 128) block so the grid
    # axis can stay 'parallel' (per-tile outputs, no cross-iteration scratch).
    sub = jax.lax.broadcasted_iota(jnp.int32, (8, 128), 0)
    out_ref[...] = jnp.where(sub == 0, tile_loss,
                             jnp.where(sub == 1, tile_cnt, 0.0))


def qfocal_loss(pred, target, alpha=0.25, gamma=2, max_tile_n=1024):
    n, c = pred.shape

    # Sample-tile size: lane-dense (multiple of 128) and pred block <= ~4 MiB
    # so double-buffered input tiles fit v7x's 64 MiB VMEM with headroom
    # (v5e/v6e have 128 MiB, so this is conservative there).
    budget_bytes = 4 * 1024 * 1024
    tile_n = min(max_tile_n, max(128, (budget_bytes // (c * 4)) // 128 * 128))
    tile_n = min(tile_n, _round_up(n, 128))
    tile_n = max(128, (tile_n // 128) * 128)

    n_pad = _round_up(n, tile_n)
    num_tiles = n_pad // tile_n

    # Wrapper-side layout plumbing: pad the sample axis (sentinel target -1 for
    # the tail) and transpose so the class axis sits on sublanes -> lane-dense.
    pred_p = jnp.pad(pred.astype(jnp.float32), ((0, n_pad - n), (0, 0)))
    pred_t = pred_p.T                                         # (C, N_pad)
    tgt_p = jnp.pad(target.astype(jnp.int32), (0, n_pad - n),
                    constant_values=-1).reshape(1, n_pad)     # (1, N_pad)

    kernel = functools.partial(qfocal_kernel, alpha=float(alpha), gamma=gamma)

    # TODO(synk): pipeline_mode=pl.Buffered(3) on the pred spec could help on
    # v7x, but default double-buffering is used here for portability.
    out = pl.pallas_call(
        kernel,
        out_shape=jax.ShapeDtypeStruct((8, num_tiles * 128), jnp.float32),
        grid=(num_tiles,),
        in_specs=[
            pl.BlockSpec((c, tile_n), lambda i: (0, i)),
            pl.BlockSpec((1, tile_n), lambda i: (0, i)),
        ],
        out_specs=pl.BlockSpec((8, 128), lambda i: (0, i)),
        compiler_params=pltpu.CompilerParams(
            dimension_semantics=("parallel",),
            vmem_limit_bytes=32 * 1024 * 1024,
        ),
    )(pred_t, tgt_p)

    parts = out.reshape(8, num_tiles, 128)
    loss_sum = parts[0, :, 0].sum()
    nonzero = parts[1, :, 0].sum()
    # NOTE: like the PyTorch module, this yields inf/nan if every target == 0.
    return loss_sum / nonzero


def qfocal_loss_ref(pred, target, alpha=0.25, gamma=2):
    n, c = pred.shape
    one_hot = jax.nn.one_hot(target, c, dtype=pred.dtype)
    pt = jnp.where(one_hot > 0, pred, 1.0 - pred)
    loss = -alpha * (1.0 - pt) ** gamma * one_hot * jnp.log(pt + 1e-08)
    return loss.sum() / (target != 0).sum()


if __name__ == "__main__":
    key = jax.random.PRNGKey(0)
    k1, k2, k3, k4 = jax.random.split(key, 4)

    # Small case: batch of 8 samples, 16 classes (probabilities in (0, 1)).
    N, C = 8, 16
    pred = jax.random.uniform(k1, (N, C), dtype=jnp.float32,
                              minval=0.05, maxval=0.95)
    target = jax.random.randint(k2, (N,), 0, C, dtype=jnp.int32)
    target = target.at[0].set(3)  # guarantee (target != 0).sum() > 0

    out = qfocal_loss(pred, target)
    jax.block_until_ready(out)
    ref = qfocal_loss_ref(pred, target)
    assert jnp.allclose(out, ref, rtol=1e-5, atol=1e-6), (out, ref)

    # Multi-tile case (forces 3 grid steps + sentinel tail padding).
    N2, C2 = 300, 16
    pred2 = jax.random.uniform(k3, (N2, C2), dtype=jnp.float32,
                               minval=0.05, maxval=0.95)
    target2 = jax.random.randint(k4, (N2,), 0, C2, dtype=jnp.int32)
    target2 = target2.at[0].set(5)

    out2 = qfocal_loss(pred2, target2, max_tile_n=128)
    jax.block_until_ready(out2)
    ref2 = qfocal_loss_ref(pred2, target2)
    assert jnp.allclose(out2, ref2, rtol=1e-4, atol=1e-6), (out2, ref2)

    print("KERNEL_OK")
</pallas_src>

<mosaic_0001>
module attributes {stable_mosaic.version = 11 : i64} {
  func.func @qfocal_kernel(%arg0: i32, %arg1: memref<16x128xf32, #tpu.memory_space<vmem>>, %arg2: memref<1x128xi32, #tpu.memory_space<vmem>>, %arg3: memref<8x128xf32, #tpu.memory_space<vmem>>) attributes {dimension_semantics = [#tpu.dimension_semantics<parallel>], iteration_bounds = array<i64: 1>, scalar_prefetch = 0 : i64, scratch_operands = 0 : i64, tpu.core_type = #tpu.core_type<tc>, window_params = [{transform_indices = @transform_0, window_bounds = array<i64: 16, 128>}, {transform_indices = @transform_1, window_bounds = array<i64: 1, 128>}, {transform_indices = @transform_2, window_bounds = array<i64: 8, 128>}]} {
    %c0 = arith.constant 0 : index
    %c0_0 = arith.constant 0 : index
    %0 = vector.load %arg1[%c0, %c0_0] : memref<16x128xf32, #tpu.memory_space<vmem>>, vector<16x128xf32>
    %c0_1 = arith.constant 0 : index
    %c0_2 = arith.constant 0 : index
    %1 = vector.load %arg2[%c0_1, %c0_2] : memref<1x128xi32, #tpu.memory_space<vmem>>, vector<1x128xi32>
    %2 = tpu.iota {dimensions = array<i32: 0>} : vector<16x128xi32>
    %3 = vector.broadcast %1 : vector<1x128xi32> to vector<16x128xi32>
    %4 = arith.cmpi eq, %2, %3 : vector<16x128xi32>
    %cst = arith.constant 0.000000e+00 : f32
    %5 = vector.broadcast %cst : f32 to vector<16x128xf32>
    %6 = arith.select %4, %0, %5 : vector<16x128xi1>, vector<16x128xf32>
    %cst_3 = arith.constant dense<0.000000e+00> : vector<128xf32>
    %7 = vector.multi_reduction <add>, %6, %cst_3 [0] : vector<16x128xf32> to vector<128xf32>
    %8 = vector.shape_cast %7 : vector<128xf32> to vector<1x128xf32>
    %c0_i32 = arith.constant 0 : i32
    %9 = vector.broadcast %c0_i32 : i32 to vector<1x128xi32>
    %10 = arith.cmpi sge, %1, %9 : vector<1x128xi32>
    %11 = arith.extui %10 : vector<1x128xi1> to vector<1x128xi32>
    %12 = arith.sitofp %11 : vector<1x128xi32> to vector<1x128xf32>
    %cst_4 = arith.constant -2.500000e-01 : f32
    %13 = vector.broadcast %cst_4 : f32 to vector<1x128xf32>
    %14 = arith.mulf %12, %13 : vector<1x128xf32>
    %cst_5 = arith.constant 1.000000e+00 : f32
    %15 = vector.broadcast %cst_5 : f32 to vector<1x128xf32>
    %16 = arith.subf %15, %8 : vector<1x128xf32>
    %17 = arith.mulf %16, %16 : vector<1x128xf32>
    %18 = arith.mulf %14, %17 : vector<1x128xf32>
    %cst_6 = arith.constant 9.99999993E-9 : f32
    %19 = vector.broadcast %cst_6 : f32 to vector<1x128xf32>
    %20 = arith.addf %8, %19 : vector<1x128xf32>
    %21 = math.log %20 : vector<1x128xf32>
    %22 = arith.mulf %18, %21 : vector<1x128xf32>
    %23 = vector.shape_cast %22 : vector<1x128xf32> to vector<1x1x128xf32>
    %cst_7 = arith.constant dense<0.000000e+00> : vector<1xf32>
    %24 = vector.multi_reduction <add>, %23, %cst_7 [1, 2] : vector<1x1x128xf32> to vector<1xf32>
    %25 = vector.shape_cast %24 : vector<1xf32> to vector<1x1x1xf32>
    %26 = vector.extract %25[0, 0, 0] : f32 from vector<1x1x1xf32>
    %c0_i32_8 = arith.constant 0 : i32
    %27 = vector.broadcast %c0_i32_8 : i32 to vector<1x128xi32>
    %28 = arith.cmpi sgt, %1, %27 : vector<1x128xi32>
    %29 = arith.extui %28 : vector<1x128xi1> to vector<1x128xi32>
    %30 = arith.sitofp %29 : vector<1x128xi32> to vector<1x128xf32>
    %31 = vector.shape_cast %30 : vector<1x128xf32> to vector<1x1x128xf32>
    %cst_9 = arith.constant dense<0.000000e+00> : vector<1xf32>
    %32 = vector.multi_reduction <add>, %31, %cst_9 [1, 2] : vector<1x1x128xf32> to vector<1xf32>
    %33 = vector.shape_cast %32 : vector<1xf32> to vector<1x1x1xf32>
    %34 = vector.extract %33[0, 0, 0] : f32 from vector<1x1x1xf32>
    %35 = tpu.iota {dimensions = array<i32: 0>} : vector<8x128xi32>
    %c0_i32_10 = arith.constant 0 : i32
    %36 = vector.broadcast %c0_i32_10 : i32 to vector<8x128xi32>
    %37 = arith.cmpi eq, %35, %36 : vector<8x128xi32>
    %c1_i32 = arith.constant 1 : i32
    %38 = vector.broadcast %c1_i32 : i32 to vector<8x128xi32>
    %39 = arith.cmpi eq, %35, %38 : vector<8x128xi32>
    %cst_11 = arith.constant 0.000000e+00 : f32
    %40 = vector.broadcast %34 : f32 to vector<8x128xf32>
    %41 = vector.broadcast %cst_11 : f32 to vector<8x128xf32>
    %42 = arith.select %39, %40, %41 : vector<8x128xi1>, vector<8x128xf32>
    %43 = vector.broadcast %26 : f32 to vector<8x128xf32>
    %44 = arith.select %37, %43, %42 : vector<8x128xi1>, vector<8x128xf32>
    %c0_12 = arith.constant 0 : index
    %c0_13 = arith.constant 0 : index
    %45 = vector.load %arg3[%c0_12, %c0_13] : memref<8x128xf32, #tpu.memory_space<vmem>>, vector<8x128xf32>
    tpu.vector_store %arg3[%c0_12, %c0_13], %44 {strides = array<i32>} : memref<8x128xf32, #tpu.memory_space<vmem>>, vector<8x128xf32>,
    return
  }
  func.func @transform_0(%arg0: i32) -> (i32, i32) {
    %c0_i32 = arith.constant 0 : i32
    %c0_i32_0 = arith.constant 0 : i32
    return %c0_i32, %arg0 : i32, i32
  }
  func.func @transform_1(%arg0: i32) -> (i32, i32) {
    %c0_i32 = arith.constant 0 : i32
    %c0_i32_0 = arith.constant 0 : i32
    return %c0_i32, %arg0 : i32, i32
  }
  func.func @transform_2(%arg0: i32) -> (i32, i32) {
    %c0_i32 = arith.constant 0 : i32
    %c0_i32_0 = arith.constant 0 : i32
    return %c0_i32, %arg0 : i32, i32
  }
}

</mosaic_0001>

<bundles_post_ra>
// kernel: tpu_custom_call.1
= control target key start
LH: loop header
LB: loop body
LE: loop exit
PB: predicated region body
PF: predicated region fallthrough
CT: control target
= control target key end

     0   :  { %7 = vsyncpa [#allocation3], 0  ;;  %s249_s0 = inlined_call_operand.hbm [shape: f32[16,128], index: 0, kind: input, shape index: {}]   ;;  %s250_s1 = inlined_call_operand.hbm [shape: s32[1,128], index: 1, kind: input, shape index: {}]   ;;  %s251_s2 = inlined_call_operand.hbm [shape: f32[8,128], index: 2, kind: output, shape index: {}]  }
   0x1   :  { %8 = vsyncpa [#allocation6], 0 }
   0x2   :  { %9 = vsyncpa [#allocation4], 0  ;;  %s14_s11 = sshll.u32 %s249_s0, 4  ;;  %s213_s12 = smov [#allocation2]   ;;  %s15_s11 = int_to_ptr.hbm [resolvable:$true] %s14_s11 }
   0x3   :  { %s16_s13 = sshll.u32 %s213_s12, 4  ;;  %s28_s16 = sshll.u32 %s250_s1, 4  ;;  %s17_s13 = int_to_ptr.vmem [resolvable:$true] %s16_s13  ;;  %s29_s16 = int_to_ptr.hbm [resolvable:$true] %s28_s16 }
   0x4   :  { %s214_s17 = smov 128   ;;  %s215_s18 = smov 8  }
   0x5   :  { %22 = dma.hbm_to_vmem [thread:$0]  %s15_s11, 256, %s17_s13, [#allocation3], %s214_s17, %s214_s17, %s215_s18  }
   0x6   :  { %s216_s19 = smov [#allocation5]  }
   0x7   :  { %s30_s20 = sshll.u32 %s216_s19, 4  ;;  %s31_s20 = int_to_ptr.vmem [resolvable:$true] %s30_s20 }
   0x8   :  { %33 = dma.hbm_to_vmem [thread:$0]  %s29_s16, 16, %s31_s20, [#allocation6]  }
   0x9   :  { %207 = dma.done.wait [#allocation3], 256  }
   0xa   :  { %208 = vsyncadd [#allocation3], 4294967040 }
   0xb   :  { %209 = dma.done.wait [#allocation6], 16  }
   0xc   :  { %210 = vsyncadd [#allocation6], 4294967280  ;;  %v45_v0 = vlaneseq  ;;  %v42_v3 = vld [vmem:[#allocation2] sm:$0xff]  ;;  %v43_v4 = vld [vmem:[#allocation2 + $0x8] sm:$0xff]  ;;  %v217_v16 = vmov 0.0   ;;  %vm71_vm3 = vcmask 1040384  }
   0xd   :  { %v132_v5 = vld [vmem:[#allocation5] ss:$0 sm:$0xff]  ;;  %s218_s0 = smov [#allocation7]   ;;  %s109_s24 = sshll.u32 %s251_s2, 4  ;;  %s110_s24 = int_to_ptr.hbm [resolvable:$true] %s109_s24 }
   0xe   :  { %v240_v1 = vshrl.u32 %v45_v0, 7  ;;  %v44_v12 = vld [vmem:[#allocation5] sm:$0x1]  ;;  %s107_s1 = sshll.u32 %s218_s0, 4  ;;  %s108_s1 = int_to_ptr.vmem [resolvable:$true] %s107_s1 }
   0xf   :  { %vm60_vm2 = vcmp.ge.s32.totalorder %v44_v12, 0  ;;  %vm82_vm4 = vcmp.gt.s32.totalorder %v44_v12, 0 }
  0x10   :  { %v47_v2 = vadd.s32 8, %v240_v1  ;;  %vm49_vm0 = vcmp.eq.s32.totalorder %v240_v1, %v132_v5  ;;  %v120_v17 = vsel %vm60_vm2, 1.0, %v217_v16  ;;  %v121_v27 = vsel %vm82_vm4, 1.0, %v217_v16 }
  0x11   :  { %v51_v6 = vsel %vm49_vm0, %v42_v3, 0.0  ;;  %v63_v20 = vmul.f32 -0.25, %v120_v17  ;;  %v85_v28 = vsel %vm71_vm3, %v121_v27, 0.0  ;;  %vm96_vm5 = vcmp.eq.s32.totalorder %v240_v1, 1 }
  0x12   :  { %vm50_vm1 = vcmp.eq.s32.totalorder %v47_v2, %v132_v5  ;;  %vm95_vm6 = vcmp.eq.s32.totalorder %v240_v1, 0 }
  0x13   :  { %v52_v7 = vsel %vm50_vm1, %v43_v4, 0.0 }
  0x14   :  { %v53_v8 = vadd.f32 %v52_v7, %v51_v6 }
  0x16   :  { %v54_v9 = vrot.slane %v53_v8, 4 }
  0x18   :  { %v55_v10 = vadd.f32 %v54_v9, %v53_v8 }
  0x1a   :  { %v56_v11 = vrot.slane %v55_v10, 2 }
  0x1c   :  { %v57_v13 = vadd.f32 %v56_v11, %v55_v10 }
  0x1e   :  { %v58_v14 = vrot.slane %v57_v13, 1 }
  0x20   :  { %v59_v15 = vadd.f32 %v58_v14, %v57_v13 }
  0x22   :  { %v64_v18 = vsub.f32 1.0, %v59_v15  ;;  %v67_v19 = vadd.f32 1e-08, %v59_v15 }
  0x24   :  { %133 = vlog2.f32 %v67_v19  ;;  %v65_v21 = vmul.f32 %v64_v18, %v64_v18 }
  0x26   :  { %v66_v22 = vmul.f32 %v65_v21, %v63_v20 }
  0x2a   :  { %v134_v23 = vpop.eup %133 }
  0x2b   :  { %v69_v24 = vmul.f32 0.6931472, %v134_v23 }
  0x2d   :  { %v70_v25 = vmul.f32 %v69_v24, %v66_v22 }
  0x2f   :  { %v72_v26 = vsel %vm71_vm3, %v70_v25, 0.0 }
  0x30   :  { %73 = vadd.xlane.f32.xlu0 %v72_v26 }
  0x38   :  { %86 = vadd.xlane.f32.xlu0 %v85_v28 }
  0xa3   :  { %v74_v29 = vpop.xlane.xlu0 %73 }
  0xa4   :  { %v75_v30 = vrot.slane %v74_v29, 4 }
  0xa6   :  { %v76_v31 = vadd.f32 %v75_v30, %v74_v29 }
  0xa8   :  { %v77_v32 = vrot.slane %v76_v31, 2 }
  0xaa   :  { %v78_v33 = vadd.f32 %v77_v32, %v76_v31 }
  0xab   :  { %v87_v34 = vpop.xlane.xlu0 %86 }
  0xac   :  { %v88_v35 = vrot.slane %v87_v34, 4  ;;  %v79_v36 = vrot.slane %v78_v33, 1 }
  0xae   :  { %v89_v37 = vadd.f32 %v88_v35, %v87_v34  ;;  %v80_v38 = vadd.f32 %v79_v36, %v78_v33 }
  0xb0   :  { %v90_v39 = vrot.slane %v89_v37, 2  ;;  %122 = vpush %v80_v38 }
  0xb2   :  { %v91_v40 = vadd.f32 %v90_v39, %v89_v37 }
  0xb4   :  { %v92_v41 = vrot.slane %v91_v40, 1 }
  0xb6   :  { %v93_v42 = vadd.f32 %v92_v41, %v91_v40 }
  0xb8   :  { %124 = vpush %v93_v42 }
  0xe1   :  { %s123_s21 = spop %122 }
  0xe2   :  { %v99_v44 = vstv %s123_s21 }
  0xe9   :  { %s125_s25 = spop %124 }
  0xea   :  { %v97_v43 = vstv %s125_s25 }
  0xeb   :  { %v98_v45 = vsel %vm96_vm5, %v97_v43, 0.0 }
  0xec   :  { %v100_v46 = vsel %vm95_vm6, %v99_v44, %v98_v45 }
  0xed   :  { %101 = vst [vmem:[#allocation7] sm:$0xff] %v100_v46 }
  0xee   :  { %112 = dma.vmem_to_hbm [thread:$0]  %s108_s1, 128, %s110_s24, [#allocation4]  }
  0xef   :  { %211 = dma.done.wait [#allocation4], 128  }
  0xf0   :  { %212 = vsyncadd [#allocation4], 4294967168 }
  0xf1   :  { %117 = vsyncpa [#allocation3], 1 }
  0xf2   :  { %118 = vsyncpa [#allocation6], 1 }
  0xf3   :  { %119 = vsyncpa [#allocation4], 1 }

</bundles_post_ra>
